<compile_context>
chip_gen: v5e
topology: v5e:2x2
jax: 0.10.0
libtpu: 0.0.40
codegen_flags: <defaults>
</compile_context>

<pallas_src>
import functools

import jax
import jax.numpy as jnp
from jax import lax
from jax.experimental import pallas as pl
from jax.experimental.pallas import tpu as pltpu


def _mlp_kernel(x_ref,
                w1_ref, b1_ref,
                w2_ref, b2_ref,
                w3_ref, b3_ref,
                w4_ref, b4_ref,
                o_ref):
    x = x_ref[...]

    # fc1 -> relu  (dropout1 is identity in eval mode)
    h = jnp.dot(x, w1_ref[...], preferred_element_type=jnp.float32) + b1_ref[...]
    h = jnp.maximum(h, 0.0)

    # batchnorm1 folded into fc2 -> relu  (dropout2 identity)
    h = jnp.dot(h.astype(w2_ref.dtype), w2_ref[...],
                preferred_element_type=jnp.float32) + b2_ref[...]
    h = jnp.maximum(h, 0.0)

    # batchnorm2 folded into fc3 -> relu  (dropout3 identity)
    h = jnp.dot(h.astype(w3_ref.dtype), w3_ref[...],
                preferred_element_type=jnp.float32) + b3_ref[...]
    h = jnp.maximum(h, 0.0)

    # fc4 with batch on the lane axis: (1, H3) x (tile_b, H3) contracted over
    # the feature axis -> (1, tile_b).  Lane-dense store, 4 B/row writeback.
    z = lax.dot_general(w4_ref[...], h.astype(w4_ref.dtype),
                        dimension_numbers=(((1,), (1,)), ((), ())),
                        preferred_element_type=jnp.float32)
    z = z + b4_ref[...]                      # (1,1) broadcast over (1, tile_b)

    # sigmoid: exp on the EUP, reciprocal as approx vrcp (EUP slot, ~free).
    o_ref[0] = pl.reciprocal(1.0 + jnp.exp(-z), approx=True)


def _round_up(a, m):
    return (a + m - 1) // m * m


def _choose_tile_b(B):
    """Batch tile: big enough to amortize per-grid-step overhead, a multiple
    of 128 (lane-dense (1, tile_b) output row) for large B, and >= 8 grid
    steps for large B so v7x's two TensorCores both get work."""
    TILE_MAX = 4096
    if B <= 1024:
        return max(8, _round_up(B, 8))       # single small tile, 8-row sublane rule
    tb = min(TILE_MAX, _round_up(pl.cdiv(B, 8), 128))
    return max(1024, tb)


@functools.partial(jax.jit, static_argnames=("tile_b", "param_dtype"))
def enhanced_nn_forward(x, params, *, tile_b=None, param_dtype=jnp.bfloat16):
    """Fused MLP forward. x: (B, input_dim) float32. Returns (B, 1) float32.

    param_dtype controls the streamed operand dtype (x + weights). Default is
    bf16 (halves HBM bytes; MXU still accumulates in f32, biases and all
    elementwise math stay f32). Pass jnp.float32 for bit-accurate operands.
    """
    B, D = x.shape
    (w1, b1, g1, be1, m1, v1,
     w2, b2, g2, be2, m2, v2,
     w3, b3, w4, b4) = params
    eps = 1e-5

    # ---- one-time wrapper preprocessing (f32, not the hot path) --------------
    # Fold eval-mode BatchNorm1d into the *next* linear layer:
    #   fc(BN(h)) = h @ (s[:,None]*W) + (t @ W + b),  s = g/sqrt(v+eps), t = be - m*s
    s1 = g1 / jnp.sqrt(v1 + eps)
    t1 = be1 - m1 * s1
    s2 = g2 / jnp.sqrt(v2 + eps)
    t2 = be2 - m2 * s2
    w2f = w2 * s1[:, None]
    b2f = b2 + t1 @ w2
    w3f = w3 * s2[:, None]
    b3f = b3 + t2 @ w3

    H1, H2, H3 = w1.shape[1], w2.shape[1], w3.shape[1]
    w4row = w4.reshape(H3, 1).T              # (1, H3): fc4 weights, batch-on-lanes form
    b4r = b4.reshape(1, 1).astype(jnp.float32)

    if tile_b is None:
        tile_b = _choose_tile_b(B)
    num_tiles = pl.cdiv(B, tile_b)           # no jnp.pad: Pallas clamps the last block

    # Streamed operands in param_dtype; biases stay f32 (added to f32 MXU acc).
    xd = x.astype(param_dtype)
    w1d = w1.astype(param_dtype)
    w2d = w2f.astype(param_dtype)
    w3d = w3f.astype(param_dtype)
    w4d = w4row.astype(param_dtype)

    def row(v):  # (H,) -> (1, H) f32, broadcasts over the batch tile
        return v.astype(jnp.float32).reshape(1, -1)

    b1r, b2r, b3r = row(b1), row(b2f), row(b3f)

    def full(a):  # grid-invariant resident operand (weights / biases)
        return pl.BlockSpec(a.shape, lambda i: (0, 0))

    out = pl.pallas_call(
        _mlp_kernel,
        out_shape=jax.ShapeDtypeStruct((num_tiles, 1, tile_b), jnp.float32),
        grid_spec=pltpu.PrefetchScalarGridSpec(
            num_scalar_prefetch=0,
            grid=(num_tiles,),
            in_specs=[
                pl.BlockSpec((tile_b, D), lambda i: (i, 0)),   # x tile (streamed)
                full(w1d), full(b1r),                          # fc1
                full(w2d), full(b2r),                          # fc2 (BN1 folded)
                full(w3d), full(b3r),                          # fc3 (BN2 folded)
                full(w4d), full(b4r),                          # fc4 (batch-on-lanes)
            ],
            out_specs=pl.BlockSpec((1, 1, tile_b), lambda i: (i, 0, 0)),
        ),
        compiler_params=pltpu.CompilerParams(
            dimension_semantics=("parallel",),
            vmem_limit_bytes=32 * 1024 * 1024),   # covers v5e's 16 MiB default
    )(xd,
      w1d, b1r,
      w2d, b2r,
      w3d, b3r,
      w4d, b4r)

    # tile i, lane j  ->  global row i*tile_b + j; drop the clamped tail rows.
    return out.reshape(num_tiles * tile_b, 1)[:B]


def init_params(key, input_dim):
    """Deterministic init mimicking PyTorch nn.Linear defaults, with
    non-trivial BatchNorm running stats so the BN folding is exercised."""
    dims = [(input_dim, 128), (128, 64), (64, 32), (32, 1)]
    keys = jax.random.split(key, 2 * len(dims) + 8)
    lin = []
    for idx, (din, dout) in enumerate(dims):
        bound = 1.0 / jnp.sqrt(din)
        w = jax.random.uniform(keys[2 * idx], (din, dout),
                               minval=-bound, maxval=bound, dtype=jnp.float32)
        b = jax.random.uniform(keys[2 * idx + 1], (dout,),
                               minval=-bound, maxval=bound, dtype=jnp.float32)
        lin.append((w, b))
    (w1, b1), (w2, b2), (w3, b3), (w4, b4) = lin

    kb = keys[2 * len(dims):]
    g1 = 1.0 + 0.1 * jax.random.normal(kb[0], (128,), jnp.float32)
    be1 = 0.1 * jax.random.normal(kb[1], (128,), jnp.float32)
    m1 = 0.1 * jax.random.normal(kb[2], (128,), jnp.float32)
    v1 = 1.0 + 0.1 * jnp.abs(jax.random.normal(kb[3], (128,), jnp.float32))
    g2 = 1.0 + 0.1 * jax.random.normal(kb[4], (64,), jnp.float32)
    be2 = 0.1 * jax.random.normal(kb[5], (64,), jnp.float32)
    m2 = 0.1 * jax.random.normal(kb[6], (64,), jnp.float32)
    v2 = 1.0 + 0.1 * jnp.abs(jax.random.normal(kb[7], (64,), jnp.float32))

    return (w1, b1, g1, be1, m1, v1,
            w2, b2, g2, be2, m2, v2,
            w3, b3, w4, b4)


def reference_forward(x, params):
    (w1, b1, g1, be1, m1, v1,
     w2, b2, g2, be2, m2, v2,
     w3, b3, w4, b4) = params
    eps = 1e-5
    h = jnp.maximum(x @ w1 + b1, 0.0)
    h = (h - m1) / jnp.sqrt(v1 + eps) * g1 + be1
    h = jnp.maximum(h @ w2 + b2, 0.0)
    h = (h - m2) / jnp.sqrt(v2 + eps) * g2 + be2
    h = jnp.maximum(h @ w3 + b3, 0.0)
    h = h @ w4 + b4
    return 1.0 / (1.0 + jnp.exp(-h))


if __name__ == "__main__":
    key = jax.random.PRNGKey(0)
    k_x, k_p = jax.random.split(key)

    batch, input_dim = 64, 32
    x = jax.random.normal(k_x, (batch, input_dim), dtype=jnp.float32)
    params = init_params(k_p, input_dim)

    ref = reference_forward(x, params)

    # Default path: bf16 streamed operands (mem-bound regime on v6e/v7x) with
    # f32 MXU accumulation — loose tolerance (x itself is quantized to bf16).
    out = jax.block_until_ready(enhanced_nn_forward(x, params))
    assert out.shape == (batch, 1)
    assert jnp.allclose(out, ref, atol=5e-2, rtol=5e-2)

    # f32 operand path — tight tolerance (approx EUP reciprocal in the sigmoid).
    out_f32 = jax.block_until_ready(
        enhanced_nn_forward(x, params, param_dtype=jnp.float32))
    assert out_f32.shape == (batch, 1)
    assert jnp.allclose(out_f32, ref, atol=2e-3, rtol=2e-3)

    print("KERNEL_OK")
</pallas_src>

<mosaic_0001>
module attributes {stable_mosaic.version = 11 : i64} {
  func.func @_mlp_kernel(%arg0: i32, %arg1: memref<64x32xbf16, #tpu.memory_space<vmem>>, %arg2: memref<32x128xbf16, #tpu.memory_space<vmem>>, %arg3: memref<1x128xf32, #tpu.memory_space<vmem>>, %arg4: memref<128x64xbf16, #tpu.memory_space<vmem>>, %arg5: memref<1x64xf32, #tpu.memory_space<vmem>>, %arg6: memref<64x32xbf16, #tpu.memory_space<vmem>>, %arg7: memref<1x32xf32, #tpu.memory_space<vmem>>, %arg8: memref<1x32xbf16, #tpu.memory_space<vmem>>, %arg9: memref<1x1xf32, #tpu.memory_space<vmem>>, %arg10: memref<1x1x64xf32, #tpu.memory_space<vmem>>) attributes {dimension_semantics = [#tpu.dimension_semantics<parallel>], iteration_bounds = array<i64: 1>, scalar_prefetch = 0 : i64, scratch_operands = 0 : i64, tpu.core_type = #tpu.core_type<tc>, window_params = [{transform_indices = @transform_0, window_bounds = array<i64: 64, 32>}, {pipeline_mode = #tpu.pipeline_mode<synchronous>, transform_indices = @transform_1, window_bounds = array<i64: 32, 128>}, {pipeline_mode = #tpu.pipeline_mode<synchronous>, transform_indices = @transform_2, window_bounds = array<i64: 1, 128>}, {pipeline_mode = #tpu.pipeline_mode<synchronous>, transform_indices = @transform_3, window_bounds = array<i64: 128, 64>}, {pipeline_mode = #tpu.pipeline_mode<synchronous>, transform_indices = @transform_4, window_bounds = array<i64: 1, 64>}, {pipeline_mode = #tpu.pipeline_mode<synchronous>, transform_indices = @transform_5, window_bounds = array<i64: 64, 32>}, {pipeline_mode = #tpu.pipeline_mode<synchronous>, transform_indices = @transform_6, window_bounds = array<i64: 1, 32>}, {pipeline_mode = #tpu.pipeline_mode<synchronous>, transform_indices = @transform_7, window_bounds = array<i64: 1, 32>}, {pipeline_mode = #tpu.pipeline_mode<synchronous>, transform_indices = @transform_8, window_bounds = array<i64: 1, 1>}, {transform_indices = @transform_9, window_bounds = array<i64: 1, 1, 64>}]} {
    %c0 = arith.constant 0 : index
    %c0_0 = arith.constant 0 : index
    %0 = vector.load %arg1[%c0, %c0_0] : memref<64x32xbf16, #tpu.memory_space<vmem>>, vector<64x32xbf16>
    %c0_1 = arith.constant 0 : index
    %c0_2 = arith.constant 0 : index
    %1 = vector.load %arg2[%c0_1, %c0_2] : memref<32x128xbf16, #tpu.memory_space<vmem>>, vector<32x128xbf16>
    %cst = arith.constant dense<0.000000e+00> : vector<64x128xf32>
    %2 = tpu.matmul %0, %1, %cst {dimension_numbers = #tpu.dot_dimension_numbers<[1], [0], [0], [1], [0, 0, 1, 1], [], []>} : vector<64x32xbf16>, vector<32x128xbf16>, vector<64x128xf32> -> vector<64x128xf32>
    %c0_3 = arith.constant 0 : index
    %c0_4 = arith.constant 0 : index
    %3 = vector.load %arg3[%c0_3, %c0_4] : memref<1x128xf32, #tpu.memory_space<vmem>>, vector<1x128xf32>
    %4 = vector.broadcast %3 : vector<1x128xf32> to vector<64x128xf32>
    %5 = arith.addf %2, %4 : vector<64x128xf32>
    %cst_5 = arith.constant 0.000000e+00 : f32
    %6 = vector.broadcast %cst_5 : f32 to vector<64x128xf32>
    %7 = arith.maximumf %5, %6 : vector<64x128xf32>
    %8 = arith.truncf %7 : vector<64x128xf32> to vector<64x128xbf16>
    %c0_6 = arith.constant 0 : index
    %c0_7 = arith.constant 0 : index
    %9 = vector.load %arg4[%c0_6, %c0_7] : memref<128x64xbf16, #tpu.memory_space<vmem>>, vector<128x64xbf16>
    %cst_8 = arith.constant dense<0.000000e+00> : vector<64x64xf32>
    %10 = tpu.matmul %8, %9, %cst_8 {dimension_numbers = #tpu.dot_dimension_numbers<[1], [0], [0], [1], [0, 0, 1, 1], [], []>} : vector<64x128xbf16>, vector<128x64xbf16>, vector<64x64xf32> -> vector<64x64xf32>
    %c0_9 = arith.constant 0 : index
    %c0_10 = arith.constant 0 : index
    %11 = vector.load %arg5[%c0_9, %c0_10] : memref<1x64xf32, #tpu.memory_space<vmem>>, vector<1x64xf32>
    %12 = vector.broadcast %11 : vector<1x64xf32> to vector<64x64xf32>
    %13 = arith.addf %10, %12 : vector<64x64xf32>
    %cst_11 = arith.constant 0.000000e+00 : f32
    %14 = vector.broadcast %cst_11 : f32 to vector<64x64xf32>
    %15 = arith.maximumf %13, %14 : vector<64x64xf32>
    %16 = arith.truncf %15 : vector<64x64xf32> to vector<64x64xbf16>
    %c0_12 = arith.constant 0 : index
    %c0_13 = arith.constant 0 : index
    %17 = vector.load %arg6[%c0_12, %c0_13] : memref<64x32xbf16, #tpu.memory_space<vmem>>, vector<64x32xbf16>
    %cst_14 = arith.constant dense<0.000000e+00> : vector<64x32xf32>
    %18 = tpu.matmul %16, %17, %cst_14 {dimension_numbers = #tpu.dot_dimension_numbers<[1], [0], [0], [1], [0, 0, 1, 1], [], []>} : vector<64x64xbf16>, vector<64x32xbf16>, vector<64x32xf32> -> vector<64x32xf32>
    %c0_15 = arith.constant 0 : index
    %c0_16 = arith.constant 0 : index
    %19 = vector.load %arg7[%c0_15, %c0_16] : memref<1x32xf32, #tpu.memory_space<vmem>>, vector<1x32xf32>
    %20 = vector.broadcast %19 : vector<1x32xf32> to vector<64x32xf32>
    %21 = arith.addf %18, %20 : vector<64x32xf32>
    %cst_17 = arith.constant 0.000000e+00 : f32
    %22 = vector.broadcast %cst_17 : f32 to vector<64x32xf32>
    %23 = arith.maximumf %21, %22 : vector<64x32xf32>
    %c0_18 = arith.constant 0 : index
    %c0_19 = arith.constant 0 : index
    %24 = vector.load %arg8[%c0_18, %c0_19] : memref<1x32xbf16, #tpu.memory_space<vmem>>, vector<1x32xbf16>
    %25 = arith.truncf %23 : vector<64x32xf32> to vector<64x32xbf16>
    %cst_20 = arith.constant dense<0.000000e+00> : vector<1x64xf32>
    %26 = tpu.matmul %24, %25, %cst_20 {dimension_numbers = #tpu.dot_dimension_numbers<[1], [1], [0], [0], [0, 0, 1, 0], [], []>} : vector<1x32xbf16>, vector<64x32xbf16>, vector<1x64xf32> -> vector<1x64xf32>
    %c0_21 = arith.constant 0 : index
    %c0_22 = arith.constant 0 : index
    %27 = vector.load %arg9[%c0_21, %c0_22] : memref<1x1xf32, #tpu.memory_space<vmem>>, vector<1x1xf32>
    %28 = vector.broadcast %27 : vector<1x1xf32> to vector<1x64xf32>
    %29 = arith.addf %26, %28 : vector<1x64xf32>
    %cst_23 = arith.constant 0.000000e+00 : f32
    %30 = vector.broadcast %cst_23 : f32 to vector<1x64xf32>
    %31 = arith.subf %30, %29 : vector<1x64xf32>
    %32 = math.exp %31 : vector<1x64xf32>
    %cst_24 = arith.constant 1.000000e+00 : f32
    %33 = vector.broadcast %cst_24 : f32 to vector<1x64xf32>
    %34 = arith.addf %33, %32 : vector<1x64xf32>
    %35 = tpu.reciprocal %34 {approx = true} : vector<1x64xf32> -> vector<1x64xf32>
    %c0_25 = arith.constant 0 : index
    %c0_26 = arith.constant 0 : index
    %c0_27 = arith.constant 0 : index
    %36 = vector.load %arg10[%c0_25, %c0_26, %c0_27] : memref<1x1x64xf32, #tpu.memory_space<vmem>>, vector<1x1x64xf32>
    %37 = vector.shape_cast %36 : vector<1x1x64xf32> to vector<1x64xf32>
    %38 = vector.shape_cast %35 : vector<1x64xf32> to vector<1x1x64xf32>
    tpu.vector_store %arg10[%c0_25, %c0_26, %c0_27], %38 {strides = array<i32>} : memref<1x1x64xf32, #tpu.memory_space<vmem>>, vector<1x1x64xf32>,
    return
  }
  func.func @transform_0(%arg0: i32) -> (i32, i32) {
    %c0_i32 = arith.constant 0 : i32
    %c0_i32_0 = arith.constant 0 : i32
    return %arg0, %c0_i32 : i32, i32
  }
  func.func @transform_1(%arg0: i32) -> (i32, i32) {
    %c0_i32 = arith.constant 0 : i32
    %c0_i32_0 = arith.constant 0 : i32
    %c0_i32_1 = arith.constant 0 : i32
    return %c0_i32, %c0_i32_0 : i32, i32
  }
  func.func @transform_2(%arg0: i32) -> (i32, i32) {
    %c0_i32 = arith.constant 0 : i32
    %c0_i32_0 = arith.constant 0 : i32
    %c0_i32_1 = arith.constant 0 : i32
    return %c0_i32, %c0_i32_0 : i32, i32
  }
  func.func @transform_3(%arg0: i32) -> (i32, i32) {
    %c0_i32 = arith.constant 0 : i32
    %c0_i32_0 = arith.constant 0 : i32
    %c0_i32_1 = arith.constant 0 : i32
    return %c0_i32, %c0_i32_0 : i32, i32
  }
  func.func @transform_4(%arg0: i32) -> (i32, i32) {
    %c0_i32 = arith.constant 0 : i32
    %c0_i32_0 = arith.constant 0 : i32
    %c0_i32_1 = arith.constant 0 : i32
    return %c0_i32, %c0_i32_0 : i32, i32
  }
  func.func @transform_5(%arg0: i32) -> (i32, i32) {
    %c0_i32 = arith.constant 0 : i32
    %c0_i32_0 = arith.constant 0 : i32
    %c0_i32_1 = arith.constant 0 : i32
    return %c0_i32, %c0_i32_0 : i32, i32
  }
  func.func @transform_6(%arg0: i32) -> (i32, i32) {
    %c0_i32 = arith.constant 0 : i32
    %c0_i32_0 = arith.constant 0 : i32
    %c0_i32_1 = arith.constant 0 : i32
    return %c0_i32, %c0_i32_0 : i32, i32
  }
  func.func @transform_7(%arg0: i32) -> (i32, i32) {
    %c0_i32 = arith.constant 0 : i32
    %c0_i32_0 = arith.constant 0 : i32
    %c0_i32_1 = arith.constant 0 : i32
    return %c0_i32, %c0_i32_0 : i32, i32
  }
  func.func @transform_8(%arg0: i32) -> (i32, i32) {
    %c0_i32 = arith.constant 0 : i32
    %c0_i32_0 = arith.constant 0 : i32
    %c0_i32_1 = arith.constant 0 : i32
    return %c0_i32, %c0_i32_0 : i32, i32
  }
  func.func @transform_9(%arg0: i32) -> (i32, i32, i32) {
    %c0_i32 = arith.constant 0 : i32
    %c0_i32_0 = arith.constant 0 : i32
    %c0_i32_1 = arith.constant 0 : i32
    return %arg0, %c0_i32, %c0_i32_0 : i32, i32, i32
  }
}

</mosaic_0001>

<bundles_post_ra>
// kernel: enhanced_nn_forward.1
= control target key start
LH: loop header
LB: loop body
LE: loop exit
PB: predicated region body
PF: predicated region fallthrough
CT: control target
= control target key end

     0   :  { %s668_s0 = inlined_call_operand.vmem [shape: bf16[64,32], index: 0, kind: input, shape index: {}]   ;;  %s669_s1 = inlined_call_operand.vmem [shape: bf16[32,128], index: 1, kind: input, shape index: {}]   ;;  %s670_s2 = inlined_call_operand.vmem [shape: f32[1,128], index: 2, kind: input, shape index: {}]   ;;  %s671_s3 = inlined_call_operand.vmem [shape: bf16[128,64], index: 3, kind: input, shape index: {}]   ;;  %s672_s4 = inlined_call_operand.vmem [shape: f32[1,64], index: 4, kind: input, shape index: {}]   ;;  %s673_s5 = inlined_call_operand.vmem [shape: bf16[64,32], index: 5, kind: input, shape index: {}]   ;;  %s674_s6 = inlined_call_operand.vmem [shape: f32[1,32], index: 6, kind: input, shape index: {}]   ;;  %s675_s7 = inlined_call_operand.vmem [shape: bf16[1,32], index: 7, kind: input, shape index: {}]   ;;  %s676_s8 = inlined_call_operand.<no memory space> [shape: f32[1,1], index: 8, kind: input, shape index: {}]   ;;  %s677_s9 = inlined_call_operand.hbm [shape: f32[1,1,64], index: 9, kind: output, shape index: {}]  }
   0x1   :  { %v14_v0 = vstv %s676_s8 }
   0x2   :  { %15 = vst [vmem:[#allocation2] sm:$0x1] %v14_v0 }
   0x3   :  { %v482_v1 = vld [vmem:[%s669_s1 + $0x8] sm:$0xff]  ;;  %v481_v2 = vld [vmem:[%s669_s1] sm:$0xff] }
   0x4   :  { %103 = vmatpush.bf16.msra.mxu0 %v482_v1 }
   0x5   :  { %16 = vsyncpa [#allocation4], 0  ;;  %v477_v3 = vld [vmem:[%s668_s0] sm:$0xff]  ;;  %vm84_vm0 = vcmask 261120   ;;  %v478_v4 = vld [vmem:[%s668_s0 + $0x8] sm:$0xff]  ;;  %vm283_vm1 = vcmask 523264  }
   0x6   :  { %v490_v5 = vld [vmem:[%s671_s3 + $0x38] sm:$0xff]  ;;  %v489_v6 = vld [vmem:[%s671_s3 + $0x30] sm:$0xff]  ;;  %v488_v7 = vld [vmem:[%s671_s3 + $0x28] sm:$0xff]  ;;  %s532_s24 = smov [#allocation3]   ;;  %s387_s28 = sshll.u32 %s677_s9, 4  ;;  %vm378_vm2 = vcmask 516096   ;;  %s388_s28 = int_to_ptr.hbm [resolvable:$true] %s387_s28 }
   0x7   :  { %206 = vmatpush.bf16.msra.mxu1 %v490_v5  ;;  %v487_v8 = vld [vmem:[%s671_s3 + $0x20] sm:$0xff]  ;;  %v479_v9 = vld [vmem:[%s668_s0 + $0x10] sm:$0xff]  ;;  %v480_v10 = vld [vmem:[%s668_s0 + $0x18] sm:$0xff]  ;;  %s385_s25 = sshll.u32 %s532_s24, 4  ;;  %s386_s25 = int_to_ptr.vmem [resolvable:$true] %s385_s25 }
   0x8   :  { %104 = vmatpush.bf16.msra.mxu0 %v481_v2  ;;  %v486_v11 = vld [vmem:[%s671_s3 + $0x18] sm:$0xff]  ;;  %v485_v12 = vld [vmem:[%s671_s3 + $0x10] sm:$0xff]  ;;  %v484_v13 = vld [vmem:[%s671_s3 + $0x8] sm:$0xff] }
   0x9   :  { %v483_v14 = vld [vmem:[%s671_s3] sm:$0xff]  ;;  %v494_v44 = vld [vmem:[%s673_s5 + $0x18] sm:$0xff]  ;;  %v493_v45 = vld [vmem:[%s673_s5 + $0x10] sm:$0xff] }
   0xa   :  { %v498_v16 = vld [vmem:[%s670_s2] ss:$0 sm:$0xff]  ;;  %300 = vmatpush.bf16.msra.mxu2 %v494_v44  ;;  %v492_v46 = vld [vmem:[%s673_s5 + $0x8] sm:$0xff] }
   0xb   :  { %420 = vmatmul.msk.bf16.vlgmr.msra.gmra.mxu0 %vm84_vm0, %v477_v3  ;;  %207 = vmatpush.bf16.msra.mxu1 %v489_v6  ;;  %v491_v47 = vld [vmem:[%s673_s5] sm:$0xff] }
   0xc   :  { %v499_v49 = vld [vmem:[%s672_s4] ss:$0 sm:$0xff] }
   0xe   :  { %301 = vmatpush.bf16.msra.mxu2 %v493_v45 }
   0xf   :  { %208 = vmatpush.bf16.msra.mxu1 %v488_v7 }
  0x12   :  { %302 = vmatpush.bf16.msra.mxu2 %v492_v46 }
  0x13   :  { %209 = vmatpush.bf16.msra.mxu1 %v487_v8 }
  0x16   :  { %303 = vmatpush.bf16.msra.mxu2 %v491_v47 }
  0x17   :  { %210 = vmatpush.bf16.msra.mxu1 %v486_v11 }
  0x1b   :  { %421 = vmatmul.msk.bf16.gmra.mxu0 %vm84_vm0, %v478_v4  ;;  %211 = vmatpush.bf16.msra.mxu1 %v485_v12 }
  0x1f   :  { %212 = vmatpush.bf16.msra.mxu1 %v484_v13 }
  0x23   :  { %213 = vmatpush.bf16.msra.mxu1 %v483_v14  ;;  %v500_v14 = vld [vmem:[%s674_s6] ss:$0 sm:$0xff] }
  0x2b   :  { %422 = vmatmul.msk.bf16.gmra.mxu0 %vm84_vm0, %v479_v9 }
  0x3b   :  { %423 = vmatmul.msk.bf16.gmra.mxu0 %vm84_vm0, %v480_v10 }
  0x88   :  { %v106_v15 = vpop.f32.mrf.mxu0 }
  0x89   :  { %v107_v17 = vadd.f32 %v498_v16, %v106_v15 }
  0x8b   :  { %v126_v20 = vmax.f32 %v107_v17, 0.0 }
  0x90   :  { %v108_v18 = vpop.f32.mrf.mxu0 }
  0x91   :  { %v109_v19 = vadd.f32 %v498_v16, %v108_v18 }
  0x93   :  { %v127_v21 = vmax.f32 %v109_v19, 0.0 }
  0x95   :  { %v134_v22 = vpack.c.bf16 %v127_v21, %v126_v20 }
  0x97   :  { %214 = vmatmul.bf16.vlgmr.msra.gmra.mxu1 %v134_v22 }
  0x98   :  { %v111_v23 = vpop.f32.mrf.mxu0 }
  0x99   :  { %v112_v24 = vadd.f32 %v498_v16, %v111_v23 }
  0x9b   :  { %v128_v27 = vmax.f32 %v112_v24, 0.0 }
  0xa0   :  { %v113_v25 = vpop.f32.mrf.mxu0 }
  0xa1   :  { %v114_v26 = vadd.f32 %v498_v16, %v113_v25 }
  0xa3   :  { %v129_v28 = vmax.f32 %v114_v26, 0.0 }
  0xa5   :  { %v135_v29 = vpack.c.bf16 %v129_v28, %v128_v27 }
  0xa7   :  { %219 = vmatmul.bf16.gmra.mxu1 %v135_v29 }
  0xa8   :  { %v116_v30 = vpop.f32.mrf.mxu0 }
  0xa9   :  { %v117_v31 = vadd.f32 %v498_v16, %v116_v30 }
  0xab   :  { %v130_v34 = vmax.f32 %v117_v31, 0.0 }
  0xb0   :  { %v118_v32 = vpop.f32.mrf.mxu0 }
  0xb1   :  { %v119_v33 = vadd.f32 %v498_v16, %v118_v32 }
  0xb3   :  { %v131_v35 = vmax.f32 %v119_v33, 0.0 }
  0xb5   :  { %v136_v36 = vpack.c.bf16 %v131_v35, %v130_v34 }
  0xb7   :  { %224 = vmatmul.bf16.gmra.mxu1 %v136_v36  ;;  %v338_v36 = vld [vmem:[#allocation2] sm:$0x1] }
  0xb8   :  { %v121_v37 = vpop.f32.mrf.mxu0 }
  0xb9   :  { %v122_v38 = vadd.f32 %v498_v16, %v121_v37  ;;  %v531_v37 = vmov 0  }
  0xba   :  { %497 = vset.pattern.permute.xlu0 %v531_v37 }
  0xbb   :  { %v132_v41 = vmax.f32 %v122_v38, 0.0  ;;  %341 = vperm.xlu0 %497, %v338_v36  }
  0xc0   :  { %v123_v39 = vpop.f32.mrf.mxu0 }
  0xc1   :  { %v124_v40 = vadd.f32 %v498_v16, %v123_v39 }
  0xc3   :  { %v133_v42 = vmax.f32 %v124_v40, 0.0 }
  0xc5   :  { %v137_v43 = vpack.c.bf16 %v133_v42, %v132_v41 }
  0xc7   :  { %229 = vmatmul.bf16.gmra.mxu1 %v137_v43 }
 0x114   :  { %v215_v48 = vpop.f32.mrf.mxu1 }
 0x115   :  { %v216_v50 = vadd.f32 %v499_v49, %v215_v48  ;;  %v333_v48 = vld [vmem:[%s675_s7] sm:$0x1] }
 0x117   :  { %v235_v53 = vmax.f32 %v216_v50, 0.0 }
 0x11c   :  { %v217_v51 = vpop.f32.mrf.mxu1 }
 0x11d   :  { %v218_v52 = vadd.f32 %v499_v49, %v217_v51 }
 0x11f   :  { %v236_v54 = vmax.f32 %v218_v52, 0.0 }
 0x121   :  { %v243_v55 = vpack.c.bf16 %v236_v54, %v235_v53 }
 0x123   :  { %472 = vmatmul.msk.bf16.vlgmr.msra.gmra.mxu2 %vm283_vm1, %v243_v55 }
 0x124   :  { %v220_v56 = vpop.f32.mrf.mxu1 }
 0x125   :  { %v221_v57 = vadd.f32 %v499_v49, %v220_v56 }
 0x127   :  { %v237_v60 = vmax.f32 %v221_v57, 0.0 }
 0x12c   :  { %v222_v58 = vpop.f32.mrf.mxu1 }
 0x12d   :  { %v223_v59 = vadd.f32 %v499_v49, %v222_v58 }
 0x12f   :  { %v238_v61 = vmax.f32 %v223_v59, 0.0 }
 0x131   :  { %v244_v62 = vpack.c.bf16 %v238_v61, %v237_v60 }
 0x133   :  { %473 = vmatmul.msk.bf16.gmra.mxu2 %vm283_vm1, %v244_v62 }
 0x134   :  { %v225_v63 = vpop.f32.mrf.mxu1 }
 0x135   :  { %v226_v0 = vadd.f32 %v499_v49, %v225_v63 }
 0x137   :  { %v239_v3 = vmax.f32 %v226_v0, 0.0 }
 0x13c   :  { %v227_v1 = vpop.f32.mrf.mxu1 }
 0x13d   :  { %v228_v2 = vadd.f32 %v499_v49, %v227_v1 }
 0x13f   :  { %v240_v4 = vmax.f32 %v228_v2, 0.0 }
 0x141   :  { %v245_v5 = vpack.c.bf16 %v240_v4, %v239_v3 }
 0x143   :  { %474 = vmatmul.msk.bf16.gmra.mxu2 %vm283_vm1, %v245_v5 }
 0x144   :  { %v230_v6 = vpop.f32.mrf.mxu1 }
 0x145   :  { %v231_v7 = vadd.f32 %v499_v49, %v230_v6 }
 0x147   :  { %v241_v10 = vmax.f32 %v231_v7, 0.0 }
 0x14c   :  { %v232_v8 = vpop.f32.mrf.mxu1 }
 0x14d   :  { %v233_v9 = vadd.f32 %v499_v49, %v232_v8  ;;  %v342_v49 = vpop.permute.xlu0 %341 }
 0x14e   :  { %v344_v50 = vperm.slane %v342_v49, 0 }
 0x14f   :  { %v242_v11 = vmax.f32 %v233_v9, 0.0 }
 0x151   :  { %v246_v12 = vpack.c.bf16 %v242_v11, %v241_v10 }
 0x153   :  { %475 = vmatmul.msk.bf16.gmra.mxu2 %vm283_vm1, %v246_v12 }
 0x1a6   :  { %v305_v13 = vpop.f32.mrf.mxu2 }
 0x1a7   :  { %v306_v15 = vadd.f32 %v500_v14, %v305_v13 }
 0x1a9   :  { %v325_v18 = vmax.f32 %v306_v15, 0.0 }
 0x1ae   :  { %v307_v16 = vpop.f32.mrf.mxu2 }
 0x1af   :  { %v308_v17 = vadd.f32 %v500_v14, %v307_v16 }
 0x1b1   :  { %v326_v19 = vmax.f32 %v308_v17, 0.0 }
 0x1b3   :  { %v334_v20 = vpack.c.bf16 %v326_v19, %v325_v18 }
 0x1b5   :  { %v349_v47 = vsel %vm84_vm0, %v334_v20, 0 }
 0x1b6   :  { %v310_v21 = vpop.f32.mrf.mxu2 }
 0x1b7   :  { %v311_v41 = vadd.f32 %v500_v14, %v310_v21 }
 0x1b9   :  { %v327_v44 = vmax.f32 %v311_v41, 0.0 }
 0x1be   :  { %v312_v22 = vpop.f32.mrf.mxu2 }
 0x1bf   :  { %v313_v39 = vadd.f32 %v500_v14, %v312_v22 }
 0x1c1   :  { %v328_v42 = vmax.f32 %v313_v39, 0.0 }
 0x1c3   :  { %v335_v45 = vpack.c.bf16 %v328_v42, %v327_v44 }
 0x1c5   :  { %v352_v46 = vsel %vm84_vm0, %v335_v45, 0 }
 0x1c6   :  { %v315_v23 = vpop.f32.mrf.mxu2 }
 0x1c7   :  { %v316_v32 = vadd.f32 %v500_v14, %v315_v23 }
 0x1c9   :  { %v329_v38 = vmax.f32 %v316_v32, 0.0 }
 0x1ce   :  { %v317_v24 = vpop.f32.mrf.mxu2 }
 0x1cf   :  { %v318_v29 = vadd.f32 %v500_v14, %v317_v24 }
 0x1d1   :  { %v330_v34 = vmax.f32 %v318_v29, 0.0 }
 0x1d3   :  { %v336_v40 = vpack.c.bf16 %v330_v34, %v329_v38 }
 0x1d5   :  { %v355_v43 = vsel %vm84_vm0, %v336_v40, 0 }
 0x1d6   :  { %v320_v25 = vpop.f32.mrf.mxu2 }
 0x1d7   :  { %v321_v26 = vadd.f32 %v500_v14, %v320_v25 }
 0x1d9   :  { %v331_v30 = vmax.f32 %v321_v26, 0.0 }
 0x1de   :  { %v322_v27 = vpop.f32.mrf.mxu2 }
 0x1df   :  { %v323_v28 = vadd.f32 %v500_v14, %v322_v27 }
 0x1e1   :  { %v332_v31 = vmax.f32 %v323_v28, 0.0 }
 0x1e3   :  { %v337_v33 = vpack.c.bf16 %v332_v31, %v331_v30 }
 0x1e5   :  { %v358_v35 = vsel %vm84_vm0, %v337_v33, 0 }
 0x1e6   :  { %364 = vmatpush.bf16.xpose.msra.mxu3 %v358_v35 }
 0x1ee   :  { %365 = vmatpush.bf16.xpose.msra.mxu3 %v355_v43 }
 0x1f6   :  { %366 = vmatpush.bf16.xpose.msra.mxu3 %v352_v46 }
 0x1fe   :  { %367 = vmatpush.bf16.xpose.msra.mxu3 %v349_v47 }
 0x205   :  { %476 = vmatmul.msk.bf16.vlgmr.msra.gmra.mxu3 %vm84_vm0, %v333_v48 }
 0x288   :  { %v369_v51 = vpop.f32.mrf.mxu3 }
 0x289   :  { %v370_v52 = vadd.f32 %v369_v51, %v344_v50 }
 0x28b   :  { %v373_v53 = vsub.f32 0.0, %v370_v52 }
 0x28d   :  { %v374_v54 = vmul.f32 1.442695, %v373_v53 }
 0x28f   :  { %501 = vpow2.f32 %v374_v54 }
 0x290   :  { %v371_v55 = vpop.f32.mrf.mxu3 }
 0x295   :  { %v502_v56 = vpop.eup %501 }
 0x296   :  { %v376_v57 = vadd.f32 1.0, %v502_v56 }
 0x298   :  { %503 = vrcp.f32 %v376_v57 }
 0x29e   :  { %v504_v58 = vpop.eup %503 }
 0x29f   :  { %379 = vst.msk [vmem:[#allocation3] sm:$0x1] %vm378_vm2, %v504_v58 }
 0x2a0   :  { %390 = dma.vmem_to_hbm [thread:$0]  %s386_s25, 16, %s388_s28, [#allocation4]  }
 0x2a1   :  { %529 = dma.done.wait [#allocation4], 16  }
 0x2a2   :  { %530 = vsyncadd [#allocation4], 4294967280 }
 0x2a3   :  { %395 = vsyncpa [#allocation4], 1 }

</bundles_post_ra>
